<compile_context>
chip_gen: v7x
topology: tpu7x:2x2x1
jax: 0.10.0
libtpu: 0.0.40
codegen_flags: <defaults>
</compile_context>

<pallas_src>
import functools

import jax
import jax.numpy as jnp
import numpy as np
from jax import lax
from jax.experimental import pallas as pl
from jax.experimental.pallas import tpu as pltpu


def _pair(v):
    return (v, v) if isinstance(v, int) else tuple(v)


def _pick_images_per_step(n):
    # Keep >= 2 grid steps so both v7x TensorCores get work; fold the rest of
    # the batch into each step to amortize per-step overhead on v5e/v6e.
    if n <= 2:
        return 1
    for nb in range(n // 2, 0, -1):
        if n % nb == 0:
            return nb
    return 1


# ---------------------------------------------------------------------------
# Pallas kernel: per image, stack the kh*kw shifted tap views along sublanes
# into a (kh*kw*Cin, Mw) column scratch and run ONE lane-dense matmul.
# ---------------------------------------------------------------------------
def _make_kernel(tap_offsets, cin, mw, nb):
    def kernel(x_ref, w_ref, b_ref, o_ref, col_ref):
        # x_ref:   (nb, Cin, Lin)        f32  padded, channel-major, flattened
        # w_ref:   (O, kh*kw*Cin)        f32  folded dictionary x lookup weights
        # b_ref:   (O, 1)                f32  bias
        # o_ref:   (nb, O, Mw)           f32  stride-1 "wide" output (lane-dense)
        # col_ref: (kh*kw*Cin, Mw)       f32  VMEM scratch (stacked tap views)
        for b in range(nb):                      # static, unrolled
            for p, off in enumerate(tap_offsets):  # static lane offsets
                col_ref[p * cin:(p + 1) * cin, :] = x_ref[b, :, off:off + mw]
            acc = jnp.dot(w_ref[...], col_ref[...],
                          preferred_element_type=jnp.float32)   # (O, Mw)
            o_ref[b] = (acc + b_ref[...]).astype(o_ref.dtype)
    return kernel


@functools.partial(jax.jit, static_argnames=("kernel_size", "stride",
                                              "padding", "dilation",
                                              "images_per_step"))
def lookup_conv2d(x, dictionary, combine, bias, *, kernel_size,
                  stride=(1, 1), padding=(0, 0), dilation=(1, 1),
                  images_per_step=None):
    """
    x:          (N, Cin, H, W)            float32, NCHW
    dictionary: (dict_size, Cin, KH, KW)  float32  (groups == 1)
    combine:    (out_channels, dict_size) dense scatter of lookup coefficients
    bias:       (out_channels,)
    returns:    (N, out_channels, Ho, Wo) NCHW
    """
    kh, kw = _pair(kernel_size)
    sh, sw = _pair(stride)
    ph, pw = _pair(padding)
    dh, dw = _pair(dilation)
    N, Cin, H, W = x.shape
    D = dictionary.shape[0]
    O = combine.shape[0]

    Hp, Wp = H + 2 * ph, W + 2 * pw
    Ho = (Hp - dh * (kh - 1) - 1) // sh + 1
    Wo = (Wp - dw * (kw - 1) - 1) // sw + 1

    # Wide (stride-1) output rows / flattened length; valid positions are
    # subsampled / cropped afterwards.
    Hw = (Ho - 1) * sh + 1
    Mw = Hw * Wp
    tap_offsets = tuple(i * dh * Wp + j * dw
                        for i in range(kh) for j in range(kw))

    # Wide-output wraparound safety: every retained output position only
    # reads inside its own padded row / inside the padded image.
    assert (Wo - 1) * sw + (kw - 1) * dw <= Wp - 1, "column wraparound"
    assert (Ho - 1) * sh + (kh - 1) * dh <= Hp - 1, "row overrun"

    # Tail rows so the furthest tap read of the last wide row stays in-bounds.
    lin_needed = max(tap_offsets) + Mw
    extra_rows = max(0, -(-(lin_needed - Hp * Wp) // Wp))
    Lin = (Hp + extra_rows) * Wp

    # Fold dictionary conv + sparse lookup combination into one conv weight,
    # laid out to match the column scratch: k = (i*kw + j)*Cin + c.
    K = kh * kw * Cin
    w_fold = (combine @ dictionary.reshape(D, Cin * kh * kw)
              ).reshape(O, Cin, kh, kw)
    w2 = w_fold.transpose(0, 2, 3, 1).reshape(O, K).astype(jnp.float32)

    # Single pad op: spatial zero-pad + tail rows together; reshape is free
    # for a contiguous NCHW array (no transpose, no second pad).
    xp = jnp.pad(x.astype(jnp.float32),
                 ((0, 0), (0, 0), (ph, ph + extra_rows), (pw, pw)))
    x_flat = xp.reshape(N, Cin, Lin)

    nb = images_per_step if images_per_step is not None \
        else _pick_images_per_step(N)
    assert N % nb == 0, "images_per_step must divide the batch"

    kernel = _make_kernel(tap_offsets, Cin, Mw, nb)

    # VMEM budget per grid step (double-buffered input/output + scratch):
    #   2*nb*Cin*Lin*4 + 2*nb*O*Mw*4 + K*Mw*4 + weights  -> well under 1 MiB
    # at these shapes; 32 MiB scoped limit is safe on v5e/v6e (128 MiB) and
    # within v7x's 64 MiB physical VMEM.
    out_wide = pl.pallas_call(
        kernel,
        out_shape=jax.ShapeDtypeStruct((N, O, Mw), jnp.float32),
        grid=(N // nb,),
        in_specs=[
            pl.BlockSpec((nb, Cin, Lin), lambda n: (n, 0, 0)),   # images
            pl.BlockSpec((O, K), lambda n: (0, 0)),              # weights
            pl.BlockSpec((O, 1), lambda n: (0, 0)),              # bias
        ],
        out_specs=pl.BlockSpec((nb, O, Mw), lambda n: (n, 0, 0)),
        scratch_shapes=[pltpu.VMEM((K, Mw), jnp.float32)],
        compiler_params=pltpu.CompilerParams(
            dimension_semantics=("parallel",),
            vmem_limit_bytes=32 * 1024 * 1024,
        ),
    )(x_flat, w2, bias.reshape(O, 1).astype(jnp.float32))

    # Already channel-major: only reshape (free) + strided subsample + crop.
    out = out_wide.reshape(N, O, Hw, Wp)[:, :, ::sh, ::sw][:, :, :, :Wo]
    return out


# ---------------------------------------------------------------------------
# Pure-JAX reference (mirrors the PyTorch forward) for a sanity check.
# ---------------------------------------------------------------------------
def reference(x, dictionary, lookup_indices, lookup_coefficients, bias,
              stride, padding, dilation):
    S = lax.conv_general_dilated(
        x, dictionary, window_strides=stride,
        padding=[(padding[0], padding[0]), (padding[1], padding[1])],
        rhs_dilation=dilation,
        dimension_numbers=("NCHW", "OIHW", "NCHW"))
    O, sparsity = lookup_indices.shape
    out = jnp.zeros((x.shape[0], O, S.shape[2], S.shape[3]), jnp.float32)
    for i in range(O):
        for j in range(sparsity):
            out = out.at[:, i].add(S[:, lookup_indices[i, j]] *
                                   lookup_coefficients[i, j])
    return out + bias.reshape(1, -1, 1, 1)


if __name__ == "__main__":
    # Module hyper-parameters (small, consistent with LookupConv2d.__init__).
    in_channels = 4
    out_channels = 8
    kernel_size = (3, 3)
    stride = (1, 1)
    padding = (1, 1)
    dilation = (1, 1)
    dictionary_size = 16
    sparsity = 3
    N, H, W = 2, 16, 16

    key = jax.random.PRNGKey(0)
    k_x, k_dict, k_coef, k_idx, k_bias = jax.random.split(key, 5)

    # Deterministic parameter init (stand-in for kaiming_uniform_ / uniform_).
    kh, kw = kernel_size
    fan_in = in_channels * kh * kw
    bound_w = float(np.sqrt(6.0 / ((1 + 5.0) * fan_in)))   # kaiming a=sqrt(5)
    dictionary = jax.random.uniform(
        k_dict, (dictionary_size, in_channels, kh, kw),
        minval=-bound_w, maxval=bound_w, dtype=jnp.float32)
    lookup_coefficients = jax.random.uniform(
        k_coef, (out_channels, sparsity), minval=-0.5, maxval=0.5,
        dtype=jnp.float32)
    lookup_indices = jax.random.randint(
        k_idx, (out_channels, sparsity), 0, dictionary_size, dtype=jnp.int32)
    bound_b = float(1.0 / np.sqrt(fan_in))
    bias = jax.random.uniform(k_bias, (out_channels,),
                              minval=-bound_b, maxval=bound_b,
                              dtype=jnp.float32)

    x = jax.random.normal(k_x, (N, in_channels, H, W), dtype=jnp.float32)

    # Dense combine matrix: scatter-add of coefficients at lookup indices
    # (repeated indices within a row accumulate, matching the PyTorch loop).
    rows = jnp.repeat(jnp.arange(out_channels), sparsity)
    combine = jnp.zeros((out_channels, dictionary_size), jnp.float32)
    combine = combine.at[rows, lookup_indices.reshape(-1)].add(
        lookup_coefficients.reshape(-1))

    out = lookup_conv2d(x, dictionary, combine, bias,
                        kernel_size=kernel_size, stride=stride,
                        padding=padding, dilation=dilation)
    out = jax.block_until_ready(out)

    ref = reference(x, dictionary, np.asarray(lookup_indices),
                    lookup_coefficients, bias, stride, padding, dilation)
    # f32 data; tolerance covers possible reduced-precision MXU passes at
    # default matmul precision (both in the kernel and in the XLA reference).
    np.testing.assert_allclose(np.asarray(out), np.asarray(ref),
                               rtol=1e-2, atol=1e-2)
    print("KERNEL_OK")
</pallas_src>

<mosaic_0001>
module attributes {stable_mosaic.version = 11 : i64} {
  func.func @kernel(%arg0: i32, %arg1: memref<1x4x342xf32, #tpu.memory_space<vmem>>, %arg2: memref<8x36xf32, #tpu.memory_space<vmem>>, %arg3: memref<8x1xf32, #tpu.memory_space<vmem>>, %arg4: memref<1x8x288xf32, #tpu.memory_space<vmem>>, %arg5: memref<36x288xf32, #tpu.memory_space<vmem>>) attributes {dimension_semantics = [#tpu.dimension_semantics<parallel>], iteration_bounds = array<i64: 2>, scalar_prefetch = 0 : i64, scratch_operands = 1 : i64, tpu.core_type = #tpu.core_type<tc>, window_params = [{transform_indices = @transform_0, window_bounds = array<i64: 1, 4, 342>}, {pipeline_mode = #tpu.pipeline_mode<synchronous>, transform_indices = @transform_1, window_bounds = array<i64: 8, 36>}, {pipeline_mode = #tpu.pipeline_mode<synchronous>, transform_indices = @transform_2, window_bounds = array<i64: 8, 1>}, {transform_indices = @transform_3, window_bounds = array<i64: 1, 8, 288>}]} {
    %c0 = arith.constant 0 : index
    %c0_0 = arith.constant 0 : index
    %c0_1 = arith.constant 0 : index
    %0 = vector.load %arg1[%c0, %c0_0, %c0_1] : memref<1x4x342xf32, #tpu.memory_space<vmem>>, vector<1x4x288xf32>
    %1 = vector.shape_cast %0 : vector<1x4x288xf32> to vector<4x288xf32>
    %c0_2 = arith.constant 0 : index
    %c0_3 = arith.constant 0 : index
    %2 = vector.load %arg5[%c0_2, %c0_3] : memref<36x288xf32, #tpu.memory_space<vmem>>, vector<4x288xf32>
    tpu.vector_store %arg5[%c0_2, %c0_3], %1 {strides = array<i32>} : memref<36x288xf32, #tpu.memory_space<vmem>>, vector<4x288xf32>,
    %c0_4 = arith.constant 0 : index
    %c0_5 = arith.constant 0 : index
    %c1 = arith.constant 1 : index
    %3 = vector.load %arg1[%c0_4, %c0_5, %c1] : memref<1x4x342xf32, #tpu.memory_space<vmem>>, vector<1x4x288xf32>
    %4 = vector.shape_cast %3 : vector<1x4x288xf32> to vector<4x288xf32>
    %c4 = arith.constant 4 : index
    %c0_6 = arith.constant 0 : index
    %5 = vector.load %arg5[%c4, %c0_6] : memref<36x288xf32, #tpu.memory_space<vmem>>, vector<4x288xf32>
    tpu.vector_store %arg5[%c4, %c0_6], %4 {strides = array<i32>} : memref<36x288xf32, #tpu.memory_space<vmem>>, vector<4x288xf32>,
    %c0_7 = arith.constant 0 : index
    %c0_8 = arith.constant 0 : index
    %c2 = arith.constant 2 : index
    %6 = vector.load %arg1[%c0_7, %c0_8, %c2] : memref<1x4x342xf32, #tpu.memory_space<vmem>>, vector<1x4x288xf32>
    %7 = vector.shape_cast %6 : vector<1x4x288xf32> to vector<4x288xf32>
    %c8 = arith.constant 8 : index
    %c0_9 = arith.constant 0 : index
    %8 = vector.load %arg5[%c8, %c0_9] : memref<36x288xf32, #tpu.memory_space<vmem>>, vector<4x288xf32>
    tpu.vector_store %arg5[%c8, %c0_9], %7 {strides = array<i32>} : memref<36x288xf32, #tpu.memory_space<vmem>>, vector<4x288xf32>,
    %c0_10 = arith.constant 0 : index
    %c0_11 = arith.constant 0 : index
    %c18 = arith.constant 18 : index
    %9 = vector.load %arg1[%c0_10, %c0_11, %c18] : memref<1x4x342xf32, #tpu.memory_space<vmem>>, vector<1x4x288xf32>
    %10 = vector.shape_cast %9 : vector<1x4x288xf32> to vector<4x288xf32>
    %c12 = arith.constant 12 : index
    %c0_12 = arith.constant 0 : index
    %11 = vector.load %arg5[%c12, %c0_12] : memref<36x288xf32, #tpu.memory_space<vmem>>, vector<4x288xf32>
    tpu.vector_store %arg5[%c12, %c0_12], %10 {strides = array<i32>} : memref<36x288xf32, #tpu.memory_space<vmem>>, vector<4x288xf32>,
    %c0_13 = arith.constant 0 : index
    %c0_14 = arith.constant 0 : index
    %c19 = arith.constant 19 : index
    %12 = vector.load %arg1[%c0_13, %c0_14, %c19] : memref<1x4x342xf32, #tpu.memory_space<vmem>>, vector<1x4x288xf32>
    %13 = vector.shape_cast %12 : vector<1x4x288xf32> to vector<4x288xf32>
    %c16 = arith.constant 16 : index
    %c0_15 = arith.constant 0 : index
    %14 = vector.load %arg5[%c16, %c0_15] : memref<36x288xf32, #tpu.memory_space<vmem>>, vector<4x288xf32>
    tpu.vector_store %arg5[%c16, %c0_15], %13 {strides = array<i32>} : memref<36x288xf32, #tpu.memory_space<vmem>>, vector<4x288xf32>,
    %c0_16 = arith.constant 0 : index
    %c0_17 = arith.constant 0 : index
    %c20 = arith.constant 20 : index
    %15 = vector.load %arg1[%c0_16, %c0_17, %c20] : memref<1x4x342xf32, #tpu.memory_space<vmem>>, vector<1x4x288xf32>
    %16 = vector.shape_cast %15 : vector<1x4x288xf32> to vector<4x288xf32>
    %c20_18 = arith.constant 20 : index
    %c0_19 = arith.constant 0 : index
    %17 = vector.load %arg5[%c20_18, %c0_19] : memref<36x288xf32, #tpu.memory_space<vmem>>, vector<4x288xf32>
    tpu.vector_store %arg5[%c20_18, %c0_19], %16 {strides = array<i32>} : memref<36x288xf32, #tpu.memory_space<vmem>>, vector<4x288xf32>,
    %c0_20 = arith.constant 0 : index
    %c0_21 = arith.constant 0 : index
    %c36 = arith.constant 36 : index
    %18 = vector.load %arg1[%c0_20, %c0_21, %c36] : memref<1x4x342xf32, #tpu.memory_space<vmem>>, vector<1x4x288xf32>
    %19 = vector.shape_cast %18 : vector<1x4x288xf32> to vector<4x288xf32>
    %c24 = arith.constant 24 : index
    %c0_22 = arith.constant 0 : index
    %20 = vector.load %arg5[%c24, %c0_22] : memref<36x288xf32, #tpu.memory_space<vmem>>, vector<4x288xf32>
    tpu.vector_store %arg5[%c24, %c0_22], %19 {strides = array<i32>} : memref<36x288xf32, #tpu.memory_space<vmem>>, vector<4x288xf32>,
    %c0_23 = arith.constant 0 : index
    %c0_24 = arith.constant 0 : index
    %c37 = arith.constant 37 : index
    %21 = vector.load %arg1[%c0_23, %c0_24, %c37] : memref<1x4x342xf32, #tpu.memory_space<vmem>>, vector<1x4x288xf32>
    %22 = vector.shape_cast %21 : vector<1x4x288xf32> to vector<4x288xf32>
    %c28 = arith.constant 28 : index
    %c0_25 = arith.constant 0 : index
    %23 = vector.load %arg5[%c28, %c0_25] : memref<36x288xf32, #tpu.memory_space<vmem>>, vector<4x288xf32>
    tpu.vector_store %arg5[%c28, %c0_25], %22 {strides = array<i32>} : memref<36x288xf32, #tpu.memory_space<vmem>>, vector<4x288xf32>,
    %c0_26 = arith.constant 0 : index
    %c0_27 = arith.constant 0 : index
    %c38 = arith.constant 38 : index
    %24 = vector.load %arg1[%c0_26, %c0_27, %c38] : memref<1x4x342xf32, #tpu.memory_space<vmem>>, vector<1x4x288xf32>
    %25 = vector.shape_cast %24 : vector<1x4x288xf32> to vector<4x288xf32>
    %c32 = arith.constant 32 : index
    %c0_28 = arith.constant 0 : index
    %26 = vector.load %arg5[%c32, %c0_28] : memref<36x288xf32, #tpu.memory_space<vmem>>, vector<4x288xf32>
    tpu.vector_store %arg5[%c32, %c0_28], %25 {strides = array<i32>} : memref<36x288xf32, #tpu.memory_space<vmem>>, vector<4x288xf32>,
    %c0_29 = arith.constant 0 : index
    %c0_30 = arith.constant 0 : index
    %27 = vector.load %arg2[%c0_29, %c0_30] : memref<8x36xf32, #tpu.memory_space<vmem>>, vector<8x36xf32>
    %c0_31 = arith.constant 0 : index
    %c0_32 = arith.constant 0 : index
    %28 = vector.load %arg5[%c0_31, %c0_32] : memref<36x288xf32, #tpu.memory_space<vmem>>, vector<36x288xf32>
    %cst = arith.constant dense<0.000000e+00> : vector<8x288xf32>
    %29 = tpu.matmul %27, %28, %cst {dimension_numbers = #tpu.dot_dimension_numbers<[1], [0], [0], [1], [0, 0, 1, 1], [], []>} : vector<8x36xf32>, vector<36x288xf32>, vector<8x288xf32> -> vector<8x288xf32>
    %c0_33 = arith.constant 0 : index
    %c0_34 = arith.constant 0 : index
    %30 = vector.load %arg3[%c0_33, %c0_34] : memref<8x1xf32, #tpu.memory_space<vmem>>, vector<8x1xf32>
    %31 = vector.broadcast %30 : vector<8x1xf32> to vector<8x288xf32>
    %32 = arith.addf %29, %31 : vector<8x288xf32>
    %c0_35 = arith.constant 0 : index
    %c0_36 = arith.constant 0 : index
    %c0_37 = arith.constant 0 : index
    %33 = vector.load %arg4[%c0_35, %c0_36, %c0_37] : memref<1x8x288xf32, #tpu.memory_space<vmem>>, vector<1x8x288xf32>
    %34 = vector.shape_cast %33 : vector<1x8x288xf32> to vector<8x288xf32>
    %35 = vector.shape_cast %32 : vector<8x288xf32> to vector<1x8x288xf32>
    tpu.vector_store %arg4[%c0_35, %c0_36, %c0_37], %35 {strides = array<i32>} : memref<1x8x288xf32, #tpu.memory_space<vmem>>, vector<1x8x288xf32>,
    return
  }
  func.func @transform_0(%arg0: i32) -> (i32, i32, i32) {
    %c0_i32 = arith.constant 0 : i32
    %c0_i32_0 = arith.constant 0 : i32
    %c0_i32_1 = arith.constant 0 : i32
    return %arg0, %c0_i32, %c0_i32_0 : i32, i32, i32
  }
  func.func @transform_1(%arg0: i32) -> (i32, i32) {
    %c0_i32 = arith.constant 0 : i32
    %c0_i32_0 = arith.constant 0 : i32
    %c0_i32_1 = arith.constant 0 : i32
    return %c0_i32, %c0_i32_0 : i32, i32
  }
  func.func @transform_2(%arg0: i32) -> (i32, i32) {
    %c0_i32 = arith.constant 0 : i32
    %c0_i32_0 = arith.constant 0 : i32
    %c0_i32_1 = arith.constant 0 : i32
    return %c0_i32, %c0_i32_0 : i32, i32
  }
  func.func @transform_3(%arg0: i32) -> (i32, i32, i32) {
    %c0_i32 = arith.constant 0 : i32
    %c0_i32_0 = arith.constant 0 : i32
    %c0_i32_1 = arith.constant 0 : i32
    return %arg0, %c0_i32, %c0_i32_0 : i32, i32, i32
  }
}

</mosaic_0001>

<bundles_post_ra>
// kernel: lookup_conv2d.1
= control target key start
LH: loop header
LB: loop body
LE: loop exit
PB: predicated region body
PF: predicated region fallthrough
CT: control target
= control target key end

     0   :  { %s697_s12 = smov 0   ;;  %s762_s0 = inlined_call_operand.vmem [shape: f32[2,4,342], index: 0, kind: input, shape index: {}]   ;;  %s763_s1 = inlined_call_operand.vmem [shape: f32[8,36], index: 1, kind: input, shape index: {}]   ;;  %s764_s2 = inlined_call_operand.vmem [shape: f32[8,1], index: 2, kind: input, shape index: {}]   ;;  %s765_s3 = inlined_call_operand.vmem [shape: f32[2,8,288], index: 3, kind: output, shape index: {}]  }
   0x1 LB: > { %s581_s13 = sadd.s32 4294967295, %s663_s12   ;;  %p585_p0 = scmp.ge.s32.totalorder %s663_s12, 1  ;;  %s663_s12 = sphi %s697_s12, %s13_s12  }
   0x2   : > { %p137_p1 = scmp.lt.s32.totalorder %s663_s12, 3 }
   0x4   : > { %p138_p2 = pnand %p585_p0, %p137_p1 }
   0x5   : > { %p161_p3 = scmp.lt.s32.totalorder (!%p138_p2), %s581_s13, 1  ;;  %s665_s18 = smov (!%p138_p2), 126   ;;  %vm178_vm0 = vcmask (!%p138_p2), 257024   ;;  %v668_v6 = vmov (!%p138_p2), 0.0|0.0   ;;  %v673_v12 = vmov (!%p138_p2), 0.0   ;;  %vm675_vm1 = vmmov (!%p138_p2), 0  }
   0x6   : > { %141 = sbr.rel (%p138_p2) target bundleno = 405 (0x195), region = 32  ;;  %s666_s19 = smov (!%p138_p2), 127   ;;  %622 = vmatprep.subr.bf16.mxu1 (!%p138_p2), %v668_v6  ;;  %445 = vmatprep.mubr.f32.mxu0 (!%p138_p2), %v673_v12  ;;  %v676_v14 = vmov (!%p138_p2), 0   ;;  %v361_v15 = vld [vmem:[%s764_s2] sm:$0xff] (!%p138_p2)  ;;  %vm213_vm2 = vcmask (!%p138_p2), 1031168   ;;  %vm200_vm3 = vcmask (!%p138_p2), 261124  }
   0x7   : > { %s667_s20 = smov (!%p138_p2), 110   ;;  %s669_s21 = smov (!%p138_p2), 109   ;;  %611 = vmatprep.mubr.msk.f32.mxu1 (!%p138_p2), %vm675_vm1, %v673_v12  ;;  %650 = vset.pattern.permute.xlu0 (!%p138_p2), %v676_v14  ;;  %vm234_vm4 = vcmask (!%p138_p2), 900096   ;;  %vm192_vm5 = vcmask (!%p138_p2), 1039360   ;;  %vm254_vm6 = vcmask (!%p138_p2), 891904   ;;  %vm275_vm7 = vcmask (!%p138_p2), 883712  }
   0x8   : > { %s670_s22 = smov (!%p138_p2), 108   ;;  %s671_s23 = smov (!%p138_p2), 92   ;;  %vm295_vm8 = vcmask (!%p138_p2), 752640   ;;  %vm316_vm9 = vcmask (!%p138_p2), 744448   ;;  %vm336_vm10 = vcmask (!%p138_p2), 736256   ;;  %vm371_vm11 = vcmask (!%p138_p2), 1043456  }
   0x9   : > { %s672_s24 = smov (!%p138_p2), 91   ;;  %s674_s25 = smov (!%p138_p2), 90   ;;  %vm367_vm12 = vcmask (!%p138_p2), 293888   ;;  %vm524_vm13 = vcmask (!%p138_p2), 261120  }
   0xd   : > { %s767_s13 = smov (!%p161_p3, %s581_s13), 1 }
   0xe   : > { %s628_s14 = smul.u32 12, %s767_s13 }
   0xf   : > { %s629_s30 = smul.u32 24, %s767_s13 }
  0x10   : > { %s711_s17 = scalar_lea.vmem %s762_s0, %s628_s14 }
  0x11   : > { %v203_v0 = vld [vmem:[%s711_s17 + $0x8] sm:$0xf]  ;;  %v180_v1 = vld [vmem:[%s711_s17] sm:$0xff]  ;;  %s170_s6 = scalar_lea.vmem %s765_s3, %s629_s30 }
  0x12   : > { %211 = vrot.lane.b32.xlu1 %v203_v0, %s665_s18  ;;  %188 = vrot.lane.b32.xlu0 %v180_v1, %s666_s19  ;;  %v206_v2 = vcombine.high %v180_v1, %v180_v1  ;;  %176 = vst [vmem:[#allocation2] sm:$0xf] %v180_v1  ;;  %v172_v3 = vld [vmem:[%s711_s17 + $0x8] sm:$0xf]  ;;  %v184_v7 = vcombine.low %v180_v1, %v180_v1 }
  0x13   : > { %v653_v4 = vld [vmem:[%s711_s17 + $0x8] ss:$0 sps:$4 sm:$0xff]   ;;  %179 = vst.msk [vmem:[#allocation2 + $0x10] sm:$0xf] %vm178_vm0, %v172_v3 }
  0x14   : > { %177 = vst [vmem:[#allocation2 + $0x8] sm:$0xf] %v206_v2  ;;  %v654_v5 = vld [vmem:[%s711_s17 + $0x8] ss:$0 sps:$4 sm:$0xff]  }
  0x15   : > { %v244_v8 = vld [vmem:[%s711_s17 + $0x8] sm:$0xf] }
  0x16   : > { %209 = vrot.lane.b32.xlu1 %v206_v2, %s665_s18  ;;  %230 = vrot.lane.b32.xlu0 %v180_v1, %s667_s20  ;;  %v655_v9 = vld [vmem:[%s711_s17 + $0x8] ss:$0 sps:$4 sm:$0xff]  }
  0x17   : > { %v285_v10 = vld [vmem:[%s711_s17 + $0x8] sm:$0xf] }
  0x18   : > { %v656_v11 = vld [vmem:[%s711_s17 + $0x8] ss:$0 sps:$4 sm:$0xff]  }
  0x19   : > { %v326_v13 = vld [vmem:[%s711_s17 + $0x8] sm:$0xf] }
  0x1a   : > { %232 = vrot.lane.b32.xlu1 %v653_v4, %s667_s20  ;;  %190 = vrot.lane.b32.xlu0 %v654_v5, %s666_s19 }
  0x1e   : > { %207 = vrot.lane.b32.xlu1 %v180_v1, %s665_s18  ;;  %186 = vrot.lane.b32.xlu0 %v184_v7, %s666_s19 }
  0x22   : > { %250 = vrot.lane.b32.xlu1 %v206_v2, %s669_s21  ;;  %228 = vrot.lane.b32.xlu0 %v184_v7, %s667_s20 }
  0x26   : > { %271 = vrot.lane.b32.xlu1 %v180_v1, %s670_s22  ;;  %252 = vrot.lane.b32.xlu0 %v244_v8, %s669_s21 }
  0x2a   : > { %291 = vrot.lane.b32.xlu1 %v206_v2, %s671_s23  ;;  %273 = vrot.lane.b32.xlu0 %v655_v9, %s670_s22 }
  0x2e   : > { %312 = vrot.lane.b32.xlu1 %v180_v1, %s672_s24  ;;  %293 = vrot.lane.b32.xlu0 %v285_v10, %s671_s23  ;;  %v345_v10 = vld [vmem:[%s763_s1] sm:$0xff] }
  0x32   : > { %248 = vrot.lane.b32.xlu1 %v180_v1, %s669_s21  ;;  %314 = vrot.lane.b32.xlu0 %v656_v11, %s672_s24 }
  0x36   : > { %289 = vrot.lane.b32.xlu1 %v180_v1, %s671_s23  ;;  %269 = vrot.lane.b32.xlu0 %v184_v7, %s670_s22 }
  0x3a   : > { %332 = vrot.lane.b32.xlu1 %v206_v2, %s674_s25  ;;  %310 = vrot.lane.b32.xlu0 %v184_v7, %s672_s24 }
  0x3e   : > { %330 = vrot.lane.b32.xlu1 %v180_v1, %s674_s25  ;;  %334 = vrot.lane.b32.xlu0 %v326_v13, %s674_s25 }
  0x42   : > { %364 = vperm.xlu0 %650, %v361_v15  }
  0x84   : > { %v212_v16 = vpop.permute.xlu1 %211  ;;  %v189_v17 = vpop.permute.xlu0 %188 }
  0x85   : > { %221 = vst.msk [vmem:[#allocation2 + $0x28] sm:$0xf] %vm178_vm0, %v212_v16 }
  0x88   : > { %v210_v18 = vpop.permute.xlu1 %209  ;;  %v231_v19 = vpop.permute.xlu0 %230 }
  0x89   : > { %v215_v20 = vsel %vm213_vm2, %v210_v18, %v212_v16 }
  0x8a   : > { %220 = vst [vmem:[#allocation2 + $0x20] sm:$0xf] %v215_v20 }
  0x8c   : > { %v233_v21 = vpop.permute.xlu1 %232  ;;  %v191_v22 = vpop.permute.xlu0 %190 }
  0x8d   : > { %v236_v23 = vsel %vm234_vm4, %v231_v19, %v233_v21  ;;  %242 = vst.msk [vmem:[#allocation2 + $0x28] sm:$0xf0] %vm200_vm3, %v233_v21  ;;  %v194_v24 = vsel %vm192_vm5, %v189_v17, %v191_v22  ;;  %201 = vst.msk [vmem:[#allocation2 + $0x10] sm:$0xf0] %vm200_vm3, %v191_v22 }
  0x8e   : > { %241 = vst [vmem:[#allocation2 + $0x20] sm:$0xf0] %v236_v23  ;;  %199 = vst [vmem:[#allocation2 + $0x8] sm:$0xf0] %v194_v24 }
  0x90   : > { %v208_v25 = vpop.permute.xlu1 %207  ;;  %v187_v26 = vpop.permute.xlu0 %186 }
  0x91   : > { %v214_v27 = vsel %vm213_vm2, %v208_v25, %v210_v18  ;;  %v193_v28 = vsel %vm192_vm5, %v187_v26, %v189_v17 }
  0x92   : > { %219 = vst [vmem:[#allocation2 + $0x18] sm:$0xf] %v214_v27  ;;  %198 = vst [vmem:[#allocation2] sm:$0xf0] %v193_v28 }
  0x94   : > { %v251_v29 = vpop.permute.xlu1 %250  ;;  %v229_v30 = vpop.permute.xlu0 %228  ;;  %v348_v31 = vld [vmem:[#allocation2 + $0x10] sm:$0xff]  ;;  %v351_v32 = vld [vmem:[#allocation2 + $0x28] sm:$0xff] }
  0x95   : > { %v235_v33 = vsel %vm234_vm4, %v229_v30, %v231_v19  ;;  %v623_v34 = vpack.c.bf16 %v351_v32, %v348_v31  ;;  %v347_v35 = vld [vmem:[#allocation2 + $0x8] sm:$0xff]  ;;  %v350_v36 = vld [vmem:[#allocation2 + $0x20] sm:$0xff] }
  0x96   : > { %240 = vst [vmem:[#allocation2 + $0x18] sm:$0xf0] %v235_v33  ;;  %v614_v37 = vpack.c.bf16 %v350_v36, %v347_v35 }
  0x97   : > { %624 = vmatpush3.bf16.msra.mxu1 %v623_v34 }
  0x98   : > { %v272_v38 = vpop.permute.xlu1 %271  ;;  %v253_v39 = vpop.permute.xlu0 %252  ;;  %615 = vmatprep.subr.bf16.mxu0 %v614_v37  ;;  %625 = vmatprep.subr.bf16.mxu1 %v668_v6 }
  0x99   : > { %v256_v40 = vsel %vm254_vm6, %v251_v29, %v253_v39  ;;  %262 = vst.msk [vmem:[#allocation2 + $0x40] sm:$0xf] %vm178_vm0, %v253_v39  ;;  %v346_v44 = vld [vmem:[#allocation2] sm:$0xff] }
  0x9a   : > { %261 = vst [vmem:[#allocation2 + $0x38] sm:$0xf] %v256_v40 }
  0x9c   : > { %v292_v41 = vpop.permute.xlu1 %291  ;;  %v274_v42 = vpop.permute.xlu0 %273 }
  0x9d   : > { %v277_v43 = vsel %vm275_vm7, %v272_v38, %v274_v42  ;;  %283 = vst.msk [vmem:[#allocation2 + $0x40] sm:$0xf0] %vm200_vm3, %v274_v42  ;;  %v349_v45 = vld [vmem:[#allocation2 + $0x18] sm:$0xff] }
  0x9e   : > { %282 = vst [vmem:[#allocation2 + $0x38] sm:$0xf0] %v277_v43  ;;  %v616_v46 = vpack.c.bf16 %v349_v45, %v346_v44 }
  0xa0   : > { %v313_v47 = vpop.permute.xlu1 %312  ;;  %v294_v48 = vpop.permute.xlu0 %293  ;;  %617 = vmatpush1.bf16.msra.mxu0 %v616_v46 }
  0xa1   : > { %v297_v49 = vsel %vm295_vm8, %v292_v41, %v294_v48  ;;  %303 = vst.msk [vmem:[#allocation2 + $0x58] sm:$0xf] %vm178_vm0, %v294_v48 }
  0xa2   : > { %302 = vst [vmem:[#allocation2 + $0x50] sm:$0xf] %v297_v49 }
  0xa4   : > { %v249_v50 = vpop.permute.xlu1 %248  ;;  %v315_v51 = vpop.permute.xlu0 %314  ;;  %v354_v60 = vld [vmem:[#allocation2 + $0x40] sm:$0xff] }
  0xa5   : > { %v255_v52 = vsel %vm254_vm6, %v249_v50, %v251_v29  ;;  %v318_v53 = vsel %vm316_vm9, %v313_v47, %v315_v51  ;;  %324 = vst.msk [vmem:[#allocation2 + $0x58] sm:$0xf0] %vm200_vm3, %v315_v51  ;;  %v353_v0 = vld [vmem:[#allocation2 + $0x38] sm:$0xff] }
  0xa6   : > { %260 = vst [vmem:[#allocation2 + $0x30] sm:$0xf] %v255_v52  ;;  %323 = vst [vmem:[#allocation2 + $0x50] sm:$0xf0] %v318_v53 }
  0xa8   : > { %v290_v54 = vpop.permute.xlu1 %289  ;;  %v270_v55 = vpop.permute.xlu0 %269 }
  0xa9   : > { %v296_v56 = vsel %vm295_vm8, %v290_v54, %v292_v41  ;;  %v276_v57 = vsel %vm275_vm7, %v270_v55, %v272_v38 }
  0xaa   : > { %301 = vst [vmem:[#allocation2 + $0x48] sm:$0xf] %v296_v56  ;;  %281 = vst [vmem:[#allocation2 + $0x30] sm:$0xf0] %v276_v57 }
  0xac   : > { %v333_v58 = vpop.permute.xlu1 %332  ;;  %v311_v59 = vpop.permute.xlu0 %310  ;;  %v357_v61 = vld [vmem:[#allocation2 + $0x58] sm:$0xff] }
  0xad   : > { %v317_v62 = vsel %vm316_vm9, %v311_v59, %v313_v47  ;;  %v626_v63 = vpack.c.bf16 %v357_v61, %v354_v60  ;;  %v356_v1 = vld [vmem:[#allocation2 + $0x50] sm:$0xff] }
  0xae   : > { %322 = vst [vmem:[#allocation2 + $0x48] sm:$0xf0] %v317_v62  ;;  %v618_v2 = vpack.c.bf16 %v356_v1, %v353_v0 }
  0xaf   : > { %627 = vmatpush3.bf16.msra.mxu1 %v626_v63 }
  0xb0   : > { %v331_v3 = vpop.permute.xlu1 %330  ;;  %v335_v4 = vpop.permute.xlu0 %334  ;;  %619 = vmatprep.subr.bf16.mxu0 %v618_v2  ;;  %609 = vmatprep.subr.mxu1 %v673_v12 }
  0xb1   : > { %v337_v5 = vsel %vm336_vm10, %v331_v3, %v333_v58  ;;  %v338_v6 = vsel %vm336_vm10, %v333_v58, %v335_v4  ;;  %344 = vst.msk [vmem:[#allocation2 + $0x70] sm:$0xf] %vm178_vm0, %v335_v4  ;;  %v352_v7 = vld [vmem:[#allocation2 + $0x30] sm:$0xff] }
  0xb2   : > { %342 = vst [vmem:[#allocation2 + $0x60] sm:$0xf] %v337_v5  ;;  %343 = vst [vmem:[#allocation2 + $0x68] sm:$0xf] %v338_v6 }
  0xb5   : > { %v355_v8 = vld [vmem:[#allocation2 + $0x48] sm:$0xff] }
  0xb6   : > { %v620_v9 = vpack.c.bf16 %v355_v8, %v352_v7 }
  0xb8   : > { %621 = vmatpush1.bf16.msra.mxu0 %v620_v9  ;;  %v360_v11 = vld [vmem:[#allocation2 + $0x70] sm:$0xf] }
  0xb9   : > { %v359_v13 = vld [vmem:[#allocation2 + $0x68] sm:$0xf]  ;;  %610 = vmatpush3.msk.msra.mxu1 %vm371_vm11, %v360_v11  ;;  %v358_v12 = vld [vmem:[#allocation2 + $0x60] sm:$0xf] }
  0xba   : > { %588 = vmatprep.subr.msk.mxu0 %vm371_vm11, %v359_v13  ;;  %612 = vmatmul.mubr.msk.f32.vlgmr.msra.gmra.mrb[0].mxu1 %vm367_vm12, %v345_v10 }
  0xbc   : > { %589 = vmatpush1.msk.msra.mxu0 %vm371_vm11, %v358_v12 }
  0xbd   : > { %590 = vmatmul.mubr.msk.f32.vlgmr.msra.gmra.mrb[0].mxu0 %vm367_vm12, %v345_v10 }
  0xc1   : > { %v365_v14 = vpop.permute.xlu0 %364 }
 0x18d   : > { %v518_v15 = vpop.f32.mrb[0].mxu1 }
 0x18e   : > { %v519_v16 = vadd.f32 %v518_v15, %v365_v14  ;;  %v613_v17 = vpop.f32.mrb[1].mxu1 }
 0x190   : > { %v447_v18 = vpop.f32.mrb[0].mxu0  ;;  %525 = vst.msk [vmem:[%s170_s6 + $0x10] sm:$0xff] %vm524_vm13, %v519_v16 }
 0x191   : > { %v448_v19 = vadd.f32 %v447_v18, %v365_v14  ;;  %v449_v20 = vpop.f32.mrb[1].mxu0 }
 0x192   : > { %v450_v21 = vadd.f32 %v449_v20, %v365_v14 }
 0x193   : > { %522 = vst [vmem:[%s170_s6] sm:$0xff] %v448_v19 }
 0x194   : > { %523 = vst [vmem:[%s170_s6 + $0x8] sm:$0xff] %v450_v21 }
 0x195 PF: > { %s13_s12 = sadd.s32 1, %s663_s12  }
 0x196   : > { %p10_p4 = scmp.ge.s32.totalorder %s13_s12, 4  }
 0x198   :  { %12 = sbr.rel (!%p10_p4) target bundleno = 1 (0x1), region = 62 }

</bundles_post_ra>
